<compile_context>
chip_gen: v7x
topology: tpu7x:2x2x1
jax: 0.10.0
libtpu: 0.0.40
codegen_flags: <defaults>
</compile_context>

<pallas_src>
import numpy as np
import jax
import jax.numpy as jnp
from jax.experimental import pallas as pl
from jax.experimental.pallas import tpu as pltpu


def _round_up(x, m):
    return ((x + m - 1) // m) * m


def _preproc_kernel(mask_ref, fill_ref, placed_ref, out_ref):
    # mask_ref:   [TBP, WP] 1.0 on lanes belonging to logical rows whose ORIGINAL
    #             (untruncated) sequence contained a NaN, 0.0 elsewhere.
    # fill_ref:   [1,  WP]  tokenized fill-value sequence, replicated per packed slot.
    # placed_ref: [TBP, WP] sequences packed K-per-physical-row, positioned per padding.
    # out_ref:    [TBP, WP]
    out_ref[...] = jnp.where(mask_ref[...] != 0.0, fill_ref[...], placed_ref[...])


def timeseries_preprocess(list_of_arrays, *, max_timeseries_length, padding,
                          padding_value, computed_fill_value):
    """JAX/Pallas equivalent of _TimeseriesPreprocessing.forward_list_of_tensors."""
    T = int(max_timeseries_length)
    assert T >= 1
    B = len(list_of_arrays)
    padding_value = float(padding_value)

    # "tokenizer" = whitespace split of the fill-value string, done host side.
    fill_seq = np.array([float(s) for s in str(computed_fill_value).split()],
                        dtype=np.float32)

    # ---- packed, lane-dense layout -----------------------------------------
    # Each physical row holds K logical rows of T_pad lanes each (WP = K*T_pad,
    # multiple of 128).  For small T this cuts HBM traffic by ~128/T vs one
    # 128-wide physical row per sample, while keeping full (unmasked) stores.
    if T >= 128:
        T_pad = _round_up(T, 128)
        WP = T_pad
        K = 1
    else:
        T_pad = 1 << (T - 1).bit_length()     # next power of 2 -> divides 128
        K = 128 // T_pad
        WP = 128

    BP = -(-max(B, 1) // K)                   # physical rows needed

    # ---- tile sizing ---------------------------------------------------------
    # Double-buffered f32 blocks for mask + placed + out, WP lanes each.
    bytes_per_row = 2 * 3 * 4 * WP
    vmem_budget = 24 * 1024 * 1024            # safe inside v7x's 32 MiB scoped VMEM
    tbp_cap = max(8, ((vmem_budget // bytes_per_row) // 8) * 8)
    # Aim for >= ~4 grid steps when B is large so both v7x TensorCores get work.
    tbp_split = max(8, _round_up(-(-BP // 4), 8))
    TBP = min(4096, tbp_cap, tbp_split)
    BP_pad = _round_up(BP, TBP)

    # ---- host-side (numpy) placement: pure layout glue, no device op graph ---
    # TODO(synk): torch's output width is data-dependent (max seq len after NaN
    # replacement, capped at T); JAX needs static shapes so the width is fixed to T.
    placed = np.full((BP_pad, WP), padding_value, dtype=np.float32)
    mask = np.zeros((BP_pad, WP), dtype=np.float32)
    for idx in range(B):
        a = np.asarray(list_of_arrays[idx], dtype=np.float32).reshape(-1)
        p, k = divmod(idx, K)
        base = k * T_pad
        limit = min(a.shape[0], T)
        if padding == "right":
            placed[p, base:base + limit] = a[:limit]
        else:   # 'left': head-truncate to T, then right-align within the T slots
            placed[p, base + T - limit:base + T] = a[:limit]
        if np.isnan(a).any():                 # NaN check on the FULL sequence
            mask[p, base:base + T_pad] = 1.0

    # Tokenized fill row, positioned the same way, replicated into every packed slot.
    flimit = min(int(fill_seq.shape[0]), T)
    fill_row = np.full((1, WP), padding_value, dtype=np.float32)
    for k in range(K):
        base = k * T_pad
        if padding == "right":
            fill_row[0, base:base + flimit] = fill_seq[:flimit]
        else:
            fill_row[0, base + T - flimit:base + T] = fill_seq[:flimit]

    mask_d = jnp.asarray(mask)
    fill_d = jnp.asarray(fill_row)
    placed_d = jnp.asarray(placed)

    grid = (BP_pad // TBP,)
    out = pl.pallas_call(
        _preproc_kernel,
        out_shape=jax.ShapeDtypeStruct((BP_pad, WP), jnp.float32),
        grid=grid,
        in_specs=[
            pl.BlockSpec((TBP, WP), lambda i: (i, 0)),   # NaN mask (lane-broadcast)
            pl.BlockSpec((1, WP), lambda i: (0, 0)),     # fill row (grid-invariant)
            pl.BlockSpec((TBP, WP), lambda i: (i, 0)),   # packed/placed rows
        ],
        out_specs=pl.BlockSpec((TBP, WP), lambda i: (i, 0)),
        input_output_aliases={2: 0},   # reuse `placed`'s HBM buffer for the output
        compiler_params=pltpu.CompilerParams(
            dimension_semantics=("parallel",),
            vmem_limit_bytes=32 * 1024 * 1024),
    )(mask_d, fill_d, placed_d)

    # Packed [BP_pad, K*T_pad] -> logical [BP_pad*K, T_pad] (contiguous), crop to [B, T].
    out = out.reshape(BP_pad * K, T_pad)
    if BP_pad * K != B or T_pad != T:
        out = out[:B, :T]
    return out


def _numpy_reference(seqs, fill_seq, T, padding, padding_value):
    rows = []
    for s in seqs:
        s = np.asarray(s, np.float32)
        if np.isnan(s).any():
            s = np.asarray(fill_seq[:T], np.float32)
        rows.append(s)
    out = np.full((len(rows), T), padding_value, np.float32)
    for i, s in enumerate(rows):
        limit = min(len(s), T)
        if padding == "right":
            out[i, :limit] = s[:limit]
        else:
            out[i, T - limit:] = s[:limit]
    return out


if __name__ == "__main__":
    key = jax.random.PRNGKey(0)
    T = 8                       # max_timeseries_length
    padding_value = 0.0
    computed_fill_value = "1 1 1 1 1 1 1 1"   # tokenizes to eight 1.0's
    fill_seq = np.array([float(s) for s in computed_fill_value.split()],
                        dtype=np.float32)

    # Deterministic variable-length input sequences (one longer than T, one with NaN).
    lengths = [5, 10, 3, 8]
    keys = jax.random.split(key, len(lengths))
    seqs = [jax.random.normal(k, (L,), dtype=jnp.float32)
            for k, L in zip(keys, lengths)]
    # Inject a NaN into the third sequence to exercise the fill path.
    seqs[2] = seqs[2].at[1].set(jnp.nan)

    ok = True
    for padding in ("right", "left"):
        out = timeseries_preprocess(
            seqs,
            max_timeseries_length=T,
            padding=padding,
            padding_value=padding_value,
            computed_fill_value=computed_fill_value,
        )
        out = jax.block_until_ready(out)
        ref = _numpy_reference([np.asarray(s) for s in seqs], fill_seq, T,
                               padding, padding_value)
        if not np.allclose(np.asarray(out), ref, atol=1e-6):
            ok = False

    print("KERNEL_OK" if ok else "KERNEL_MISMATCH")
</pallas_src>

<mosaic_0001>
module attributes {stable_mosaic.version = 11 : i64} {
  func.func @_preproc_kernel(%arg0: i32, %arg1: memref<8x128xf32, #tpu.memory_space<vmem>>, %arg2: memref<1x128xf32, #tpu.memory_space<vmem>>, %arg3: memref<8x128xf32, #tpu.memory_space<vmem>>, %arg4: memref<8x128xf32, #tpu.memory_space<vmem>>) attributes {dimension_semantics = [#tpu.dimension_semantics<parallel>], iteration_bounds = array<i64: 1>, scalar_prefetch = 0 : i64, scratch_operands = 0 : i64, tpu.core_type = #tpu.core_type<tc>, window_params = [{transform_indices = @transform_0, window_bounds = array<i64: 8, 128>}, {pipeline_mode = #tpu.pipeline_mode<synchronous>, transform_indices = @transform_1, window_bounds = array<i64: 1, 128>}, {transform_indices = @transform_2, window_bounds = array<i64: 8, 128>}, {transform_indices = @transform_3, window_bounds = array<i64: 8, 128>}]} {
    %c0 = arith.constant 0 : index
    %c0_0 = arith.constant 0 : index
    %0 = vector.load %arg1[%c0, %c0_0] : memref<8x128xf32, #tpu.memory_space<vmem>>, vector<8x128xf32>
    %cst = arith.constant 0.000000e+00 : f32
    %1 = vector.broadcast %cst : f32 to vector<8x128xf32>
    %2 = arith.cmpf one, %0, %1 : vector<8x128xf32>
    %c0_1 = arith.constant 0 : index
    %c0_2 = arith.constant 0 : index
    %3 = vector.load %arg2[%c0_1, %c0_2] : memref<1x128xf32, #tpu.memory_space<vmem>>, vector<1x128xf32>
    %c0_3 = arith.constant 0 : index
    %c0_4 = arith.constant 0 : index
    %4 = vector.load %arg3[%c0_3, %c0_4] : memref<8x128xf32, #tpu.memory_space<vmem>>, vector<8x128xf32>
    %5 = vector.shape_cast %3 : vector<1x128xf32> to vector<1x128xf32>
    %6 = vector.broadcast %5 : vector<1x128xf32> to vector<8x128xf32>
    %7 = arith.select %2, %6, %4 : vector<8x128xi1>, vector<8x128xf32>
    %c0_5 = arith.constant 0 : index
    %c0_6 = arith.constant 0 : index
    %8 = vector.load %arg4[%c0_5, %c0_6] : memref<8x128xf32, #tpu.memory_space<vmem>>, vector<8x128xf32>
    tpu.vector_store %arg4[%c0_5, %c0_6], %7 {strides = array<i32>} : memref<8x128xf32, #tpu.memory_space<vmem>>, vector<8x128xf32>,
    return
  }
  func.func @transform_0(%arg0: i32) -> (i32, i32) {
    %c0_i32 = arith.constant 0 : i32
    %c0_i32_0 = arith.constant 0 : i32
    return %arg0, %c0_i32 : i32, i32
  }
  func.func @transform_1(%arg0: i32) -> (i32, i32) {
    %c0_i32 = arith.constant 0 : i32
    %c0_i32_0 = arith.constant 0 : i32
    %c0_i32_1 = arith.constant 0 : i32
    return %c0_i32, %c0_i32_0 : i32, i32
  }
  func.func @transform_2(%arg0: i32) -> (i32, i32) {
    %c0_i32 = arith.constant 0 : i32
    %c0_i32_0 = arith.constant 0 : i32
    return %arg0, %c0_i32 : i32, i32
  }
  func.func @transform_3(%arg0: i32) -> (i32, i32) {
    %c0_i32 = arith.constant 0 : i32
    %c0_i32_0 = arith.constant 0 : i32
    return %arg0, %c0_i32 : i32, i32
  }
}

</mosaic_0001>

<bundles_post_ra>
// kernel: tpu_custom_call.1
= control target key start
LH: loop header
LB: loop body
LE: loop exit
PB: predicated region body
PF: predicated region fallthrough
CT: control target
= control target key end

     0   :  { %8 = vsyncpa [#allocation3], 0  ;;  %s157_s0 = inlined_call_operand.vmem [shape: f32[8,128], index: 0, kind: input, shape index: {}]   ;;  %s158_s1 = inlined_call_operand.vmem [shape: f32[1,128], index: 1, kind: input, shape index: {}]   ;;  %s159_s2 = inlined_call_operand.hbm [shape: f32[8,128], index: 2, kind: input, shape index: {}, may-alias: {2,3}]   ;;  %s160_s3 = inlined_call_operand.hbm [shape: f32[8,128], index: 3, kind: output, shape index: {}, may-alias: {2,3}]  }
   0x1   :  { %9 = vsyncpa [#allocation4], 0  ;;  %s105_s12 = smov [#allocation2]   ;;  %s57_s16 = scalar_lea.hbm %s159_s2, 128 }
   0x2   :  { %s20_s13 = sshll.u32 %s105_s12, 4  ;;  %p58_p0 = scmp.ne.s32.totalorder %s159_s2, %s57_s16  ;;  %s21_s13 = int_to_ptr.vmem [resolvable:$true] %s20_s13 }
   0x3   :  { %p61_p1 = scmp.lt.u32.totalorder %s57_s16, %s159_s2 }
   0x5   :  { %p63_p2 = pnand %p61_p1, %p58_p0 }
   0x7   :  { %66 = shalt.err (!%p63_p2)
}
   0x8   :  { %s67_s21 = scalar_lea.vmem %s21_s13, 128  ;;  %p72_p4 = scmp.lt.s32.totalorder %s21_s13, %s21_s13 }
   0x9   :  { %p68_p3 = scmp.ne.s32.totalorder %s21_s13, %s67_s21  ;;  %p73_p5 = scmp.lt.s32.totalorder %s67_s21, %s67_s21 }
   0xb   :  { %p74_p6 = por %p73_p5, %p72_p4 }
   0xd   :  { %p75_p7 = pnand %p74_p6, %p68_p3 }
   0xf   :  { %78 = shalt.err (!%p75_p7)
}
  0x10   :  { %23 = dma.hbm_to_vmem [thread:$0]  %s159_s2, 128, %s21_s13, [#allocation3]  }
  0x11   :  { %101 = dma.done.wait [#allocation3], 128  }
  0x12   :  { %102 = vsyncadd [#allocation3], 4294967168  ;;  %s106_s24 = smov [#allocation5]   ;;  %v27_v0 = vld [vmem:[%s157_s0] sm:$0xff]  ;;  %v30_v2 = vld [vmem:[#allocation2] sm:$0xff] }
  0x13   :  { %s45_s25 = sshll.u32 %s106_s24, 4  ;;  %v54_v1 = vld [vmem:[%s158_s1] ss:$0 sm:$0xff]  ;;  %vm28_vm0 = vcmp.ne.f32.partialorder %v27_v0, 0.0  ;;  %s46_s25 = int_to_ptr.vmem [resolvable:$true] %s45_s25 }
  0x14   :  { %v37_v3 = vsel %vm28_vm0, %v54_v1, %v30_v2  ;;  %s79_s30 = scalar_lea.vmem %s46_s25, 128  ;;  %p84_p9 = scmp.lt.s32.totalorder %s46_s25, %s46_s25 }
  0x15   :  { %38 = vst [vmem:[#allocation5] sm:$0xff] %v37_v3  ;;  %p80_p8 = scmp.ne.s32.totalorder %s46_s25, %s79_s30  ;;  %p85_p10 = scmp.lt.s32.totalorder %s79_s30, %s79_s30 }
  0x17   :  { %p86_p11 = por %p85_p10, %p84_p9 }
  0x19   :  { %p87_p12 = pnand %p86_p11, %p80_p8 }
  0x1b   :  { %90 = shalt.err (!%p87_p12)
}
  0x1c   :  { %s91_s0 = scalar_lea.hbm %s160_s3, 128 }
  0x1d   :  { %p92_p13 = scmp.ne.s32.totalorder %s160_s3, %s91_s0  ;;  %p95_p0 = scmp.lt.u32.totalorder %s91_s0, %s160_s3 }
  0x1f   :  { %p97_p1 = pnand %p95_p0, %p92_p13 }
  0x21   :  { %100 = shalt.err (!%p97_p1)
}
  0x22   :  { %48 = dma.vmem_to_hbm [thread:$0]  %s46_s25, 128, %s160_s3, [#allocation4]  }
  0x23   :  { %103 = dma.done.wait [#allocation4], 128  }
  0x24   :  { %104 = vsyncadd [#allocation4], 4294967168 }
  0x25   :  { %52 = vsyncpa [#allocation3], 1 }
  0x26   :  { %53 = vsyncpa [#allocation4], 1 }

</bundles_post_ra>
